<compile_context>
chip_gen: v7x
topology: tpu7x:2x2x1
jax: 0.10.0
libtpu: 0.0.40
codegen_flags: <defaults>
</compile_context>

<pallas_src>
import functools
import math

import jax
import jax.numpy as jnp
import numpy as np
from jax.experimental import pallas as pl
from jax.experimental.pallas import tpu as pltpu

LANES = 128     # vreg lane width; all fused weights / epilogue matrices are padded to 128 columns
_BT_CAP = 512   # batch-tile cap (sweep 256/512/1024 per chip if desired)


# ----------------------------------------------------------------------------
# Parameter construction (glue, deterministic) — mirrors NoisyLinear init + noise
# ----------------------------------------------------------------------------
def _scale_noise(key, size):
    x = jax.random.normal(key, (size,), dtype=jnp.float32)
    return jnp.sign(x) * jnp.sqrt(jnp.abs(x))


def noisy_linear_effective_params(key, fan_in, fan_out, std_init=0.5):
    """Returns (W, b) with W: (fan_in, fan_out), b: (1, fan_out) — training-mode weights."""
    k1, k2, k3, k4 = jax.random.split(key, 4)
    mu_range = 1.0 / math.sqrt(fan_in)
    w_mu = jax.random.uniform(k1, (fan_in, fan_out), jnp.float32, -mu_range, mu_range)
    b_mu = jax.random.uniform(k2, (fan_out,), jnp.float32, -mu_range, mu_range)
    w_sigma = jnp.full((fan_in, fan_out), std_init / math.sqrt(fan_in), jnp.float32)
    b_sigma = jnp.full((fan_out,), std_init / math.sqrt(fan_out), jnp.float32)
    eps_in = _scale_noise(k3, fan_in)
    eps_out = _scale_noise(k4, fan_out)
    w = w_mu + w_sigma * jnp.outer(eps_in, eps_out)
    b = b_mu + b_sigma * eps_out
    return w, b.reshape(1, -1)


def build_params(key, in_features, hidden, action_shape, n_atoms, noisy_std):
    keys = jax.random.split(key, 6)
    # value head: in -> H -> H -> n_atoms
    w1v, b1v = noisy_linear_effective_params(keys[0], in_features, hidden, noisy_std)
    w2v, b2v = noisy_linear_effective_params(keys[1], hidden, hidden, noisy_std)
    w3v, b3v = noisy_linear_effective_params(keys[2], hidden, n_atoms, noisy_std)
    # advantage head: in -> H -> H -> action_shape * n_atoms
    w1a, b1a = noisy_linear_effective_params(keys[3], in_features, hidden, noisy_std)
    w2a, b2a = noisy_linear_effective_params(keys[4], hidden, hidden, noisy_std)
    w3a, b3a = noisy_linear_effective_params(keys[5], hidden, action_shape * n_atoms, noisy_std)
    return (w1v, b1v, w2v, b2v, w3v, b3v, w1a, b1a, w2a, b2a, w3a, b3a)


# ----------------------------------------------------------------------------
# Glue-side fusion: one 128-lane-padded parameter slab (weights + dueling fold + epilogue matrices)
# ----------------------------------------------------------------------------
def pack_params(params, atoms, *, in_features, hidden, action_shape, n_atoms):
    """Slab (IN + 5*128 + 8, 128) f32:
       rows [0, IN)              : fused layer-1  [W1v | W1a | 0]
       rows [IN, IN+128)         : block-diag layer-2 (W2v, W2a)
       rows [IN+128, IN+256)     : layer-3 with dueling combine folded in (per-action logits)
       rows [IN+256, IN+384)     : OnesBlk   (block-diag 16x16 ones   -> softmax denominators)
       rows [IN+384, IN+512)     : AtomBlk   (block-diag atoms        -> expected Q per action)
       rows [IN+512, IN+640)     : GatherBlk (segment -> lanes [0,N)  -> chosen-dist gather)
       rows [IN+640, IN+648)     : b1 / b2 / b3' + zero padding
    """
    (w1v, b1v, w2v, b2v, w3v, b3v, w1a, b1a, w2a, b2a, w3a, b3a) = params
    IN, H, A, N = in_features, hidden, action_shape, n_atoms
    H2, AN = 2 * H, A * N
    assert IN % 8 == 0, "in_features must be a multiple of 8 for sublane alignment"
    assert H2 <= LANES and AN <= LANES and N < LANES, "fused widths must fit in 128 lanes"

    # layer 1: [W1v | W1a | 0]
    w1 = jnp.zeros((IN, LANES), jnp.float32).at[:, :H].set(w1v).at[:, H:H2].set(w1a)
    b1 = jnp.zeros((1, LANES), jnp.float32).at[:, :H].set(b1v).at[:, H:H2].set(b1a)

    # layer 2: block-diag(W2v, W2a)
    w2 = jnp.zeros((LANES, LANES), jnp.float32).at[:H, :H].set(w2v).at[H:H2, H:H2].set(w2a)
    b2 = jnp.zeros((1, LANES), jnp.float32).at[:, :H].set(b2v).at[:, H:H2].set(b2a)

    # layer 3 with the dueling combine folded in (linear in h => zero extra FLOPs):
    #   logits_j = h_v @ W3v + h_a @ (W3a_j - mean_k W3a_k) + (b3v + b3a_j - mean_k b3a_k)
    w3a_blocks = w3a.reshape(H, A, N)
    w3a_adj = (w3a_blocks - w3a_blocks.mean(axis=1, keepdims=True)).reshape(H, AN)
    w3_top = jnp.tile(w3v, (1, A))                                   # every action block sees W3v
    w3 = jnp.zeros((LANES, LANES), jnp.float32).at[:H, :AN].set(w3_top).at[H:H2, :AN].set(w3a_adj)

    b3a_blocks = b3a.reshape(A, N)
    b3_adj = (b3v.reshape(1, N) + b3a_blocks - b3a_blocks.mean(axis=0, keepdims=True)).reshape(1, AN)
    b3 = jnp.zeros((1, LANES), jnp.float32).at[:, :AN].set(b3_adj)

    # epilogue helper matrices (block-diagonal over the A atom-segments)
    ones_blk = jnp.zeros((LANES, LANES), jnp.float32)
    atom_blk = jnp.zeros((LANES, LANES), jnp.float32)
    gather_blk = jnp.zeros((LANES, LANES), jnp.float32)
    atoms_col = atoms.reshape(N, 1).astype(jnp.float32)
    for j in range(A):
        s = j * N
        ones_blk = ones_blk.at[s:s + N, s:s + N].set(jnp.ones((N, N), jnp.float32))
        atom_blk = atom_blk.at[s:s + N, s:s + N].set(jnp.broadcast_to(atoms_col, (N, N)))
        gather_blk = gather_blk.at[s:s + N, 0:N].set(jnp.eye(N, dtype=jnp.float32))

    tail = jnp.concatenate([b1, b2, b3, jnp.zeros((5, LANES), jnp.float32)], axis=0)
    slab = jnp.concatenate([w1, w2, w3, ones_blk, atom_blk, gather_blk, tail], axis=0)
    assert slab.shape[0] % 8 == 0
    return slab


# ----------------------------------------------------------------------------
# Pallas kernel + wrapper
# ----------------------------------------------------------------------------
def _qnet_kernel(x_ref, p_ref, out_ref, *, in_features, hidden, action_shape, n_atoms):
    del hidden  # the two hidden trunks live in the fused/block-diag weights
    IN, A, N = in_features, action_shape, n_atoms
    AN = A * N
    Bt = x_ref.shape[0]

    r_w2 = IN
    r_w3 = IN + LANES
    r_ones = IN + 2 * LANES
    r_atom = IN + 3 * LANES
    r_gather = IN + 4 * LANES
    r_tail = IN + 5 * LANES

    x = x_ref[...]                              # (Bt, IN)
    w1 = p_ref[0:IN, :]                         # (IN, 128)   [W1v | W1a | 0]
    w2 = p_ref[r_w2:r_w2 + LANES, :]            # (128, 128)  blkdiag(W2v, W2a)
    w3 = p_ref[r_w3:r_w3 + LANES, :]            # (128, 128)  dueling-folded layer 3
    ones_blk = p_ref[r_ones:r_ones + LANES, :]
    atom_blk = p_ref[r_atom:r_atom + LANES, :]
    gather_blk = p_ref[r_gather:r_gather + LANES, :]
    tail = p_ref[r_tail:r_tail + 8, :]          # (8, 128) aligned bias load
    b1 = tail[0:1, :]
    b2 = tail[1:2, :]
    b3 = tail[2:3, :]

    # Trunk: 3 fused MXU matmuls; padded lanes carry exact zeros so results match the unfused net.
    h = jnp.maximum(jnp.dot(x, w1, preferred_element_type=jnp.float32) + b1, 0.0)
    h = jnp.maximum(jnp.dot(h, w2, preferred_element_type=jnp.float32) + b2, 0.0)
    logits = jnp.dot(h, w3, preferred_element_type=jnp.float32) + b3   # (Bt,128), cols [0,AN) = per-action logits

    lane = jax.lax.broadcasted_iota(jnp.int32, (Bt, LANES), 1)
    valid = lane < AN
    neg_inf = jnp.float32(-jnp.inf)

    # Full-lane softmax over atoms. A single per-row max is subtracted (mathematically identical
    # to the per-action max subtraction; FP differences are ulp-level for realistic logit ranges).
    masked = jnp.where(valid, logits, neg_inf)
    row_max = jnp.max(masked, axis=-1, keepdims=True)
    e = jnp.exp(masked - row_max)                                      # padding lanes -> exp(-inf) = 0
    denom = jnp.dot(e, ones_blk, preferred_element_type=jnp.float32)   # per-action sum broadcast over its segment
    denom = jnp.where(valid, denom, 1.0)                               # keep padding lanes NaN-free
    inv = pl.reciprocal(denom, approx=False)   # exact, preserves 1e-5 check (approx=True is a free EUP op if tolerance allows)
    p = e * inv                                                        # per-action softmax probs; pads stay 0

    # Expected Q per action, broadcast over its segment (MXU); argmax with exact first-index tie-break.
    qq = jnp.dot(e, atom_blk, preferred_element_type=jnp.float32) * inv    # lanes of segment j all hold Q_j
    best_q = jnp.max(jnp.where(valid, qq, neg_inf), axis=-1, keepdims=True)
    is_best = jnp.logical_and(qq == best_q, valid)
    first_lane = jnp.min(jnp.where(is_best, lane, LANES), axis=-1, keepdims=True)  # = best_action * N

    # Gather the chosen action's distribution into lanes [0,N) with one more MXU pass.
    sel_mask = jnp.logical_and(lane >= first_lane, lane < first_lane + N)
    sel = jnp.where(sel_mask, p, 0.0)
    chosen = jnp.dot(sel, gather_blk, preferred_element_type=jnp.float32)  # lanes [0,N) = dist, rest exactly 0

    # Lane-dense packed output: lanes [0,N) = chosen distribution, lane N = best_action*N (exact small int in f32).
    out_ref[...] = jnp.where(lane == N, first_lane.astype(jnp.float32), chosen)


def _pick_block_batch(B):
    """Batch-tile: largest multiple-of-8 divisor of B that is <= _BT_CAP, preferring >= 2 grid
    steps once B >= 64 so dimension_semantics=('parallel',) can shard across both v7x cores."""
    if B % 8 != 0:
        return B                          # block == full array also satisfies the (8,128) rule
    cap = min(_BT_CAP, B)
    if B >= 64:
        cap = min(cap, B // 2)
    cap -= cap % 8
    for bt in range(cap, 0, -8):
        if B % bt == 0:
            return bt
    return B


def qnet_forward(x, param_slab, *, in_features, hidden, action_shape, n_atoms):
    """Returns (action (B,) int32, chosen_dist (B, n_atoms) f32) — same as module.forward(x)."""
    B = x.shape[0]
    N = n_atoms
    bt = _pick_block_batch(B)

    kernel = functools.partial(
        _qnet_kernel, in_features=in_features, hidden=hidden,
        action_shape=action_shape, n_atoms=n_atoms)

    out = pl.pallas_call(
        kernel,
        out_shape=jax.ShapeDtypeStruct((B, LANES), jnp.float32),
        grid=(B // bt,),
        in_specs=[
            pl.BlockSpec((bt, in_features), lambda i: (i, 0)),     # batch-tiled activations
            pl.BlockSpec(param_slab.shape, lambda i: (0, 0)),      # single resident param slab
        ],
        out_specs=pl.BlockSpec((bt, LANES), lambda i: (i, 0)),
        compiler_params=pltpu.CompilerParams(
            dimension_semantics=("parallel",)),                    # shards batch tiles across v7x cores
    )(x, param_slab)

    action = out[:, N].astype(jnp.int32) // N   # lane N holds best_action * N exactly
    dist = out[:, :N]
    return action, dist


# ----------------------------------------------------------------------------
# Pure-JAX reference (unfused) for sanity check
# ----------------------------------------------------------------------------
def qnet_reference(x, params, atoms, *, action_shape, n_atoms):
    (w1v, b1v, w2v, b2v, w3v, b3v, w1a, b1a, w2a, b2a, w3a, b3a) = params
    hv = jnp.maximum(x @ w1v + b1v, 0.0)
    hv = jnp.maximum(hv @ w2v + b2v, 0.0)
    v = (hv @ w3v + b3v).reshape(-1, 1, n_atoms)
    ha = jnp.maximum(x @ w1a + b1a, 0.0)
    ha = jnp.maximum(ha @ w2a + b2a, 0.0)
    a = (ha @ w3a + b3a).reshape(-1, action_shape, n_atoms)
    logit = v + a - a.mean(axis=1, keepdims=True)
    logit = jax.nn.softmax(logit, axis=-1)
    q = (logit * atoms.reshape(1, 1, -1)).sum(axis=2)
    action = jnp.argmax(q, axis=1)
    return action, logit[jnp.arange(x.shape[0]), action]


if __name__ == "__main__":
    # Small, module-consistent shapes
    B = 8
    in_features = 32
    hidden_features = 32
    action_shape = 4
    n_atoms = 16
    v_min, v_max = -10.0, 10.0
    noisy_std = 0.5

    key = jax.random.PRNGKey(0)
    kx, kp = jax.random.split(key)
    x = jax.random.normal(kx, (B, in_features), dtype=jnp.float32)
    params = build_params(kp, in_features, hidden_features, action_shape, n_atoms, noisy_std)
    atoms = jnp.linspace(v_min, v_max, n_atoms, dtype=jnp.float32).reshape(1, n_atoms)

    param_slab = pack_params(params, atoms, in_features=in_features, hidden=hidden_features,
                             action_shape=action_shape, n_atoms=n_atoms)

    action, chosen_dist = qnet_forward(
        x, param_slab, in_features=in_features, hidden=hidden_features,
        action_shape=action_shape, n_atoms=n_atoms)
    jax.block_until_ready((action, chosen_dist))

    ref_action, ref_dist = qnet_reference(
        x, params, atoms, action_shape=action_shape, n_atoms=n_atoms)
    np.testing.assert_array_equal(np.asarray(action), np.asarray(ref_action))
    np.testing.assert_allclose(np.asarray(chosen_dist), np.asarray(ref_dist),
                               rtol=1e-5, atol=1e-5)

    print("KERNEL_OK")
</pallas_src>

<mosaic_0001>
module attributes {stable_mosaic.version = 11 : i64} {
  func.func @_qnet_kernel(%arg0: i32, %arg1: memref<8x32xf32, #tpu.memory_space<vmem>>, %arg2: memref<680x128xf32, #tpu.memory_space<vmem>>, %arg3: memref<8x128xf32, #tpu.memory_space<vmem>>) attributes {dimension_semantics = [#tpu.dimension_semantics<parallel>], iteration_bounds = array<i64: 1>, scalar_prefetch = 0 : i64, scratch_operands = 0 : i64, tpu.core_type = #tpu.core_type<tc>, window_params = [{transform_indices = @transform_0, window_bounds = array<i64: 8, 32>}, {pipeline_mode = #tpu.pipeline_mode<synchronous>, transform_indices = @transform_1, window_bounds = array<i64: 680, 128>}, {transform_indices = @transform_2, window_bounds = array<i64: 8, 128>}]} {
    %c0 = arith.constant 0 : index
    %c0_0 = arith.constant 0 : index
    %0 = vector.load %arg1[%c0, %c0_0] : memref<8x32xf32, #tpu.memory_space<vmem>>, vector<8x32xf32>
    %c0_1 = arith.constant 0 : index
    %c0_2 = arith.constant 0 : index
    %1 = vector.load %arg2[%c0_1, %c0_2] : memref<680x128xf32, #tpu.memory_space<vmem>>, vector<32x128xf32>
    %c32 = arith.constant 32 : index
    %c0_3 = arith.constant 0 : index
    %2 = vector.load %arg2[%c32, %c0_3] : memref<680x128xf32, #tpu.memory_space<vmem>>, vector<128x128xf32>
    %c160 = arith.constant 160 : index
    %c0_4 = arith.constant 0 : index
    %3 = vector.load %arg2[%c160, %c0_4] : memref<680x128xf32, #tpu.memory_space<vmem>>, vector<128x128xf32>
    %c288 = arith.constant 288 : index
    %c0_5 = arith.constant 0 : index
    %4 = vector.load %arg2[%c288, %c0_5] : memref<680x128xf32, #tpu.memory_space<vmem>>, vector<128x128xf32>
    %c416 = arith.constant 416 : index
    %c0_6 = arith.constant 0 : index
    %5 = vector.load %arg2[%c416, %c0_6] : memref<680x128xf32, #tpu.memory_space<vmem>>, vector<128x128xf32>
    %c544 = arith.constant 544 : index
    %c0_7 = arith.constant 0 : index
    %6 = vector.load %arg2[%c544, %c0_7] : memref<680x128xf32, #tpu.memory_space<vmem>>, vector<128x128xf32>
    %c672 = arith.constant 672 : index
    %c0_8 = arith.constant 0 : index
    %7 = vector.load %arg2[%c672, %c0_8] : memref<680x128xf32, #tpu.memory_space<vmem>>, vector<8x128xf32>
    %8 = vector.extract_strided_slice %7 {offsets = [0, 0], sizes = [1, 128], strides = [1, 1]} : vector<8x128xf32> to vector<1x128xf32>
    %9 = vector.extract_strided_slice %7 {offsets = [1, 0], sizes = [1, 128], strides = [1, 1]} : vector<8x128xf32> to vector<1x128xf32>
    %10 = vector.extract_strided_slice %7 {offsets = [2, 0], sizes = [1, 128], strides = [1, 1]} : vector<8x128xf32> to vector<1x128xf32>
    %cst = arith.constant dense<0.000000e+00> : vector<8x128xf32>
    %11 = tpu.matmul %0, %1, %cst {dimension_numbers = #tpu.dot_dimension_numbers<[1], [0], [0], [1], [0, 0, 1, 1], [], []>} : vector<8x32xf32>, vector<32x128xf32>, vector<8x128xf32> -> vector<8x128xf32>
    %12 = vector.broadcast %8 : vector<1x128xf32> to vector<8x128xf32>
    %13 = arith.addf %11, %12 : vector<8x128xf32>
    %cst_9 = arith.constant 0.000000e+00 : f32
    %14 = vector.broadcast %cst_9 : f32 to vector<8x128xf32>
    %15 = arith.maximumf %13, %14 : vector<8x128xf32>
    %cst_10 = arith.constant dense<0.000000e+00> : vector<8x128xf32>
    %16 = tpu.matmul %15, %2, %cst_10 {dimension_numbers = #tpu.dot_dimension_numbers<[1], [0], [0], [1], [0, 0, 1, 1], [], []>} : vector<8x128xf32>, vector<128x128xf32>, vector<8x128xf32> -> vector<8x128xf32>
    %17 = vector.broadcast %9 : vector<1x128xf32> to vector<8x128xf32>
    %18 = arith.addf %16, %17 : vector<8x128xf32>
    %cst_11 = arith.constant 0.000000e+00 : f32
    %19 = vector.broadcast %cst_11 : f32 to vector<8x128xf32>
    %20 = arith.maximumf %18, %19 : vector<8x128xf32>
    %cst_12 = arith.constant dense<0.000000e+00> : vector<8x128xf32>
    %21 = tpu.matmul %20, %3, %cst_12 {dimension_numbers = #tpu.dot_dimension_numbers<[1], [0], [0], [1], [0, 0, 1, 1], [], []>} : vector<8x128xf32>, vector<128x128xf32>, vector<8x128xf32> -> vector<8x128xf32>
    %22 = vector.broadcast %10 : vector<1x128xf32> to vector<8x128xf32>
    %23 = arith.addf %21, %22 : vector<8x128xf32>
    %24 = tpu.iota {dimensions = array<i32: 1>} : vector<8x128xi32>
    %c64_i32 = arith.constant 64 : i32
    %25 = vector.broadcast %c64_i32 : i32 to vector<8x128xi32>
    %26 = arith.cmpi slt, %24, %25 : vector<8x128xi32>
    %cst_13 = arith.constant 0xFF800000 : f32
    %27 = vector.broadcast %cst_13 : f32 to vector<8x128xf32>
    %28 = arith.select %26, %23, %27 : vector<8x128xi1>, vector<8x128xf32>
    %cst_14 = arith.constant dense<0xFF800000> : vector<8xf32>
    %29 = vector.multi_reduction <maximumf>, %28, %cst_14 [1] : vector<8x128xf32> to vector<8xf32>
    %30 = vector.shape_cast %29 : vector<8xf32> to vector<8x1xf32>
    %31 = vector.broadcast %30 : vector<8x1xf32> to vector<8x128xf32>
    %32 = arith.subf %28, %31 : vector<8x128xf32>
    %33 = math.exp %32 : vector<8x128xf32>
    %cst_15 = arith.constant dense<0.000000e+00> : vector<8x128xf32>
    %34 = tpu.matmul %33, %4, %cst_15 {dimension_numbers = #tpu.dot_dimension_numbers<[1], [0], [0], [1], [0, 0, 1, 1], [], []>} : vector<8x128xf32>, vector<128x128xf32>, vector<8x128xf32> -> vector<8x128xf32>
    %cst_16 = arith.constant 1.000000e+00 : f32
    %35 = vector.broadcast %cst_16 : f32 to vector<8x128xf32>
    %36 = arith.select %26, %34, %35 : vector<8x128xi1>, vector<8x128xf32>
    %37 = tpu.reciprocal %36 : vector<8x128xf32> -> vector<8x128xf32>
    %38 = arith.mulf %33, %37 : vector<8x128xf32>
    %cst_17 = arith.constant dense<0.000000e+00> : vector<8x128xf32>
    %39 = tpu.matmul %33, %5, %cst_17 {dimension_numbers = #tpu.dot_dimension_numbers<[1], [0], [0], [1], [0, 0, 1, 1], [], []>} : vector<8x128xf32>, vector<128x128xf32>, vector<8x128xf32> -> vector<8x128xf32>
    %40 = arith.mulf %39, %37 : vector<8x128xf32>
    %cst_18 = arith.constant 0xFF800000 : f32
    %41 = vector.broadcast %cst_18 : f32 to vector<8x128xf32>
    %42 = arith.select %26, %40, %41 : vector<8x128xi1>, vector<8x128xf32>
    %cst_19 = arith.constant dense<0xFF800000> : vector<8xf32>
    %43 = vector.multi_reduction <maximumf>, %42, %cst_19 [1] : vector<8x128xf32> to vector<8xf32>
    %44 = vector.shape_cast %43 : vector<8xf32> to vector<8x1xf32>
    %45 = vector.broadcast %44 : vector<8x1xf32> to vector<8x128xf32>
    %46 = arith.cmpf oeq, %40, %45 : vector<8x128xf32>
    %47 = arith.andi %46, %26 : vector<8x128xi1>
    %c128_i32 = arith.constant 128 : i32
    %48 = vector.broadcast %c128_i32 : i32 to vector<8x128xi32>
    %49 = arith.select %47, %24, %48 : vector<8x128xi1>, vector<8x128xi32>
    %cst_20 = arith.constant dense<2147483647> : vector<8xi32>
    %50 = vector.multi_reduction <minsi>, %49, %cst_20 [1] : vector<8x128xi32> to vector<8xi32>
    %51 = vector.shape_cast %50 : vector<8xi32> to vector<8x1xi32>
    %52 = vector.broadcast %51 : vector<8x1xi32> to vector<8x128xi32>
    %53 = arith.cmpi sge, %24, %52 : vector<8x128xi32>
    %c16_i32 = arith.constant 16 : i32
    %54 = vector.broadcast %c16_i32 : i32 to vector<8x1xi32>
    %55 = arith.addi %51, %54 : vector<8x1xi32>
    %56 = vector.broadcast %55 : vector<8x1xi32> to vector<8x128xi32>
    %57 = arith.cmpi slt, %24, %56 : vector<8x128xi32>
    %58 = arith.andi %53, %57 : vector<8x128xi1>
    %cst_21 = arith.constant 0.000000e+00 : f32
    %59 = vector.broadcast %cst_21 : f32 to vector<8x128xf32>
    %60 = arith.select %58, %38, %59 : vector<8x128xi1>, vector<8x128xf32>
    %cst_22 = arith.constant dense<0.000000e+00> : vector<8x128xf32>
    %61 = tpu.matmul %60, %6, %cst_22 {dimension_numbers = #tpu.dot_dimension_numbers<[1], [0], [0], [1], [0, 0, 1, 1], [], []>} : vector<8x128xf32>, vector<128x128xf32>, vector<8x128xf32> -> vector<8x128xf32>
    %c16_i32_23 = arith.constant 16 : i32
    %62 = vector.broadcast %c16_i32_23 : i32 to vector<8x128xi32>
    %63 = arith.cmpi eq, %24, %62 : vector<8x128xi32>
    %64 = arith.sitofp %51 : vector<8x1xi32> to vector<8x1xf32>
    %65 = vector.shape_cast %64 : vector<8x1xf32> to vector<8x1xf32>
    %66 = vector.broadcast %65 : vector<8x1xf32> to vector<8x128xf32>
    %67 = arith.select %63, %66, %61 : vector<8x128xi1>, vector<8x128xf32>
    %c0_24 = arith.constant 0 : index
    %c0_25 = arith.constant 0 : index
    %68 = vector.load %arg3[%c0_24, %c0_25] : memref<8x128xf32, #tpu.memory_space<vmem>>, vector<8x128xf32>
    tpu.vector_store %arg3[%c0_24, %c0_25], %67 {strides = array<i32>} : memref<8x128xf32, #tpu.memory_space<vmem>>, vector<8x128xf32>,
    return
  }
  func.func @transform_0(%arg0: i32) -> (i32, i32) {
    %c0_i32 = arith.constant 0 : i32
    %c0_i32_0 = arith.constant 0 : i32
    return %arg0, %c0_i32 : i32, i32
  }
  func.func @transform_1(%arg0: i32) -> (i32, i32) {
    %c0_i32 = arith.constant 0 : i32
    %c0_i32_0 = arith.constant 0 : i32
    %c0_i32_1 = arith.constant 0 : i32
    return %c0_i32, %c0_i32_0 : i32, i32
  }
  func.func @transform_2(%arg0: i32) -> (i32, i32) {
    %c0_i32 = arith.constant 0 : i32
    %c0_i32_0 = arith.constant 0 : i32
    return %arg0, %c0_i32 : i32, i32
  }
}

</mosaic_0001>

<bundles_post_ra>
// kernel: tpu_custom_call.1
= control target key start
LH: loop header
LB: loop body
LE: loop exit
PB: predicated region body
PF: predicated region fallthrough
CT: control target
= control target key end

     0   :  { %7 = vsyncpa [#allocation3], 0  ;;  %s1260_s0 = inlined_call_operand.hbm [shape: f32[8,32], index: 0, kind: input, shape index: {}]   ;;  %s1261_s1 = inlined_call_operand.hbm [shape: f32[680,128], index: 1, kind: input, shape index: {}]   ;;  %s1262_s2 = inlined_call_operand.hbm [shape: f32[8,128], index: 2, kind: output, shape index: {}]  }
   0x1   :  { %8 = vsyncpa [#allocation6], 0 }
   0x2   :  { %9 = vsyncpa [#allocation4], 0  ;;  %s1108_s9 = smov [#allocation2]   ;;  %s1109_s11 = smov [#allocation5]  }
   0x3   :  { %s16_s10 = sshll.u32 %s1108_s9, 4  ;;  %s25_s12 = sshll.u32 %s1109_s11, 4  ;;  %s17_s10 = int_to_ptr.vmem [resolvable:$true] %s16_s10  ;;  %s1131_s12 = int_to_ptr.vmem [resolvable:$true] %s25_s12 }
   0x4   :  { %s1036_s15 = scalar_lea.hbm %s1260_s0, 128 }
   0x5   :  { %p1037_p0 = scmp.ne.s32.totalorder %s1260_s0, %s1036_s15  ;;  %p1040_p1 = scmp.lt.u32.totalorder %s1036_s15, %s1260_s0 }
   0x7   :  { %p1042_p2 = pnand %p1040_p1, %p1037_p0 }
   0x9   :  { %1045 = shalt.err (!%p1042_p2)
}
   0xa   :  { %s1046_s20 = scalar_lea.vmem %s17_s10, 128  ;;  %p1051_p4 = scmp.lt.s32.totalorder %s17_s10, %s17_s10 }
   0xb   :  { %p1047_p3 = scmp.ne.s32.totalorder %s17_s10, %s1046_s20  ;;  %p1052_p5 = scmp.lt.s32.totalorder %s1046_s20, %s1046_s20 }
   0xd   :  { %p1053_p6 = por %p1052_p5, %p1051_p4 }
   0xf   :  { %p1054_p7 = pnand %p1053_p6, %p1047_p3 }
  0x11   :  { %1057 = shalt.err (!%p1054_p7)
}
  0x12   :  { %19 = dma.hbm_to_vmem [thread:$0]  %s1260_s0, 128, %s17_s10, [#allocation3]  }
  0x13   :  { %s1058_s25 = scalar_lea.hbm %s1261_s1, 10880 }
  0x14   :  { %p1059_p8 = scmp.ne.s32.totalorder %s1261_s1, %s1058_s25  ;;  %p1062_p9 = scmp.lt.u32.totalorder %s1058_s25, %s1261_s1 }
  0x16   :  { %p1064_p10 = pnand %p1062_p9, %p1059_p8 }
  0x18   :  { %1067 = shalt.err (!%p1064_p10)
}
  0x19   :  { %s1068_s30 = scalar_lea.vmem %s1131_s12, 10880  ;;  %p1073_p12 = scmp.lt.s32.totalorder %s1131_s12, %s1131_s12 }
  0x1a   :  { %p1069_p11 = scmp.ne.s32.totalorder %s1131_s12, %s1068_s30  ;;  %p1074_p13 = scmp.lt.s32.totalorder %s1068_s30, %s1068_s30 }
  0x1c   :  { %p1075_p0 = por %p1074_p13, %p1073_p12 }
  0x1e   :  { %p1076_p1 = pnand %p1075_p0, %p1069_p11 }
  0x20   :  { %1079 = shalt.err (!%p1076_p1)
}
  0x21   :  { %s1110_s0 = smov 128   ;;  %s1111_s3 = smov 8  }
  0x22   :  { %31 = dma.hbm_to_vmem [thread:$0]  %s1261_s1, 10880, %s1131_s12, [#allocation6], %s1110_s0, %s1110_s0, %s1111_s3  }
  0x23   :  { %1102 = dma.done.wait [#allocation3], 128  }
  0x24   :  { %1103 = vsyncadd [#allocation3], 4294967168 }
  0x25   :  { %1104 = dma.done.wait [#allocation6], 10880  }
  0x26   :  { %1105 = vsyncadd [#allocation6], 4294956416  ;;  %v1112_v0 = vmov 0.0|0.0   ;;  %vm1113_vm0 = vmmov 0   ;;  %v1114_v1 = vmov 0.0   ;;  %v39_v2 = vld [vmem:[#allocation5] sm:$0xff]  ;;  %v124_v54 = vlaneseq }
  0x27   :  { %898 = vmatprep.subr.bf16.mxu0 %v1112_v0  ;;  %720 = vmatprep.mubr.msk.f32.mxu0 %vm1113_vm0, %v1114_v1  ;;  %v40_v3 = vld [vmem:[#allocation5 + $0x8] sm:$0xff]  ;;  %v41_v4 = vld [vmem:[#allocation5 + $0x10] sm:$0xff]  ;;  %v42_v6 = vld [vmem:[#allocation5 + $0x18] sm:$0xff]  ;;  %vm128_vm1 = vcmask 261120   ;;  %s1115_s1 = smov [#allocation7]  }
  0x28   :  { %904 = vmatprep.subr.bf16.mxu1 %v1112_v0  ;;  %755 = vmatprep.mubr.msk.f32.mxu1 %vm1113_vm0, %v1114_v1  ;;  %v899_v5 = vpack.c.bf16 %v40_v3, %v39_v2  ;;  %v43_v7 = vld [vmem:[#allocation5 + $0x20] sm:$0xff]  ;;  %v44_v8 = vld [vmem:[#allocation5 + $0x28] sm:$0xff]  ;;  %v45_v9 = vld [vmem:[#allocation5 + $0x30] sm:$0xff]  ;;  %v902_v11 = vpack.c.bf16 %v42_v6, %v41_v4  ;;  %v1188_v55 = vshrl.u32 %v124_v54, 7  ;;  %s610_s6 = sshll.u32 %s1115_s1, 4  ;;  %s611_s6 = int_to_ptr.vmem [resolvable:$true] %s610_s6 }
  0x29   :  { %v46_v10 = vld [vmem:[#allocation5 + $0x38] sm:$0xff]  ;;  %v905_v12 = vpack.c.bf16 %v44_v8, %v43_v7  ;;  %v47_v14 = vld [vmem:[#allocation5 + $0x40] sm:$0xff]  ;;  %v48_v15 = vld [vmem:[#allocation5 + $0x48] sm:$0xff]  ;;  %s1080_s7 = scalar_lea.vmem %s611_s6, 128  ;;  %p1085_p3 = scmp.lt.s32.totalorder %s611_s6, %s611_s6 }
  0x2a   :  { %900 = vmatpush3.bf16.msra.mxu0 %v899_v5  ;;  %v908_v13 = vpack.c.bf16 %v46_v10, %v45_v9  ;;  %v38_v16 = vld [vmem:[#allocation2] sm:$0xff]  ;;  %v911_v17 = vpack.c.bf16 %v48_v15, %v47_v14  ;;  %v49_v18 = vld [vmem:[#allocation5 + $0x50] sm:$0xff]  ;;  %v51_v21 = vld [vmem:[#allocation5 + $0x60] sm:$0xff]  ;;  %v126_v56 = vsub.s32 0, %v1188_v55  ;;  %v205_v4 = vsub.s32 1, %v1188_v55  ;;  %p1081_p2 = scmp.ne.s32.totalorder %s611_s6, %s1080_s7  ;;  %p1086_p4 = scmp.lt.s32.totalorder %s1080_s7, %s1080_s7 }
  0x2b   :  { %901 = vmatprep.subr.bf16.mxu0 %v1112_v0  ;;  %906 = vmatpush3.bf16.msra.mxu1 %v905_v12  ;;  %v50_v19 = vld [vmem:[#allocation5 + $0x58] sm:$0xff]  ;;  %v52_v22 = vld [vmem:[#allocation5 + $0x68] sm:$0xff]  ;;  %v53_v24 = vld [vmem:[#allocation5 + $0x70] sm:$0xff] }
  0x2c   :  { %907 = vmatprep.subr.bf16.mxu1 %v1112_v0  ;;  %v914_v20 = vpack.c.bf16 %v50_v19, %v49_v18  ;;  %v917_v23 = vpack.c.bf16 %v52_v22, %v51_v21  ;;  %v54_v25 = vld [vmem:[#allocation5 + $0x78] sm:$0xff]  ;;  %v55_v27 = vld [vmem:[#allocation5 + $0x80] sm:$0xff]  ;;  %v56_v28 = vld [vmem:[#allocation5 + $0x88] sm:$0xff]  ;;  %p1087_p5 = por %p1086_p4, %p1085_p3 }
  0x2d   :  { %v920_v26 = vpack.c.bf16 %v54_v25, %v53_v24  ;;  %v923_v29 = vpack.c.bf16 %v56_v28, %v55_v27  ;;  %v57_v30 = vld [vmem:[#allocation5 + $0x90] sm:$0xff]  ;;  %v58_v31 = vld [vmem:[#allocation5 + $0x98] sm:$0xff]  ;;  %v59_v33 = vld [vmem:[#allocation5 + $0xa0] sm:$0xff] }
  0x2e   :  { %903 = vmatpush3.bf16.msra.mxu0 %v902_v11  ;;  %v926_v32 = vpack.c.bf16 %v58_v31, %v57_v30  ;;  %v60_v34 = vld [vmem:[#allocation5 + $0xa8] sm:$0xff]  ;;  %v61_v35 = vld [vmem:[#allocation5 + $0xb0] sm:$0xff]  ;;  %v62_v37 = vld [vmem:[#allocation5 + $0xb8] sm:$0xff]  ;;  %p1088_p6 = pnand %p1087_p5, %p1081_p2 }
  0x2f   :  { %928 = vmatprep.subr.bf16.mxu0 %v1112_v0  ;;  %909 = vmatpush3.bf16.msra.mxu1 %v908_v13  ;;  %v929_v36 = vpack.c.bf16 %v60_v34, %v59_v33  ;;  %v932_v38 = vpack.c.bf16 %v62_v37, %v61_v35  ;;  %v63_v39 = vld [vmem:[#allocation5 + $0xc0] sm:$0xff]  ;;  %v64_v40 = vld [vmem:[#allocation5 + $0xc8] sm:$0xff]  ;;  %v65_v42 = vld [vmem:[#allocation5 + $0xd0] sm:$0xff]  ;;  %v280_v34 = vsub.s32 2, %v1188_v55  ;;  %v1211_v35 = vand.u32 127, %v124_v54 }
  0x30   :  { %910 = vmatprep.subr.bf16.mxu1 %v1112_v0  ;;  %v935_v41 = vpack.c.bf16 %v64_v40, %v63_v39  ;;  %v66_v43 = vld [vmem:[#allocation5 + $0xd8] sm:$0xff]  ;;  %v67_v45 = vld [vmem:[#allocation5 + $0xe0] sm:$0xff]  ;;  %v68_v46 = vld [vmem:[#allocation5 + $0xe8] sm:$0xff] }
  0x31   :  { %721 = vmatmul.mubr.msk.f32.vlgmr.msra.gmra.mrb[0].mxu0 %vm128_vm1, %v38_v16  ;;  %v938_v44 = vpack.c.bf16 %v66_v43, %v65_v42  ;;  %v941_v47 = vpack.c.bf16 %v68_v46, %v67_v45  ;;  %v69_v48 = vld [vmem:[#allocation5 + $0xf0] sm:$0xff]  ;;  %v70_v49 = vld [vmem:[#allocation5 + $0xf8] sm:$0xff]  ;;  %v71_v51 = vld [vmem:[#allocation5 + $0x100] sm:$0xff]  ;;  %vm354_vm2 = vcmp.lt.s32.totalorder %v1211_v35, 64  ;;  %vm600_vm9 = vcmp.eq.s32.totalorder %v1211_v35, 16 }
  0x32   :  { %790 = vmatprep.mubr.msk.f32.mxu0 %vm1113_vm0, %v1114_v1  ;;  %930 = vmatpush3.bf16.msra.mxu0 %v929_v36  ;;  %v944_v50 = vpack.c.bf16 %v70_v49, %v69_v48  ;;  %v72_v52 = vld [vmem:[#allocation5 + $0x108] sm:$0xff]  ;;  %v1191_v57 = vld [vmem:[#allocation5 + $0x2a0] sm:$0xff]  ;;  %v73_v63 = vld [vmem:[#allocation5 + $0x110] sm:$0xff] }
  0x33   :  { %912 = vmatpush3.bf16.msra.mxu1 %v911_v17  ;;  %931 = vmatprep.subr.bf16.mxu0 %v1112_v0  ;;  %v947_v53 = vpack.c.bf16 %v72_v52, %v71_v51  ;;  %v127_v58 = vrot.slane %v1191_v57, %v126_v56  ;;  %v74_v2 = vld [vmem:[#allocation5 + $0x118] sm:$0xff]  ;;  %v206_v5 = vrot.slane %v1191_v57, %v205_v4  ;;  %v75_v10 = vld [vmem:[#allocation5 + $0x120] sm:$0xff]  ;;  %v76_v11 = vld [vmem:[#allocation5 + $0x128] sm:$0xff] }
  0x34   :  { %913 = vmatprep.subr.bf16.mxu1 %v1112_v0  ;;  %v950_v3 = vpack.c.bf16 %v74_v2, %v73_v63  ;;  %v91_v12 = vld [vmem:[#allocation5 + $0x1a0] sm:$0xff]  ;;  %v953_v13 = vpack.c.bf16 %v76_v11, %v75_v10  ;;  %v92_v14 = vld [vmem:[#allocation5 + $0x1a8] sm:$0xff]  ;;  %v77_v15 = vld [vmem:[#allocation5 + $0x130] sm:$0xff]  ;;  %v281_v36 = vrot.slane %v1191_v57, %v280_v34 }
  0x35   :  { %v78_v16 = vld [vmem:[#allocation5 + $0x138] sm:$0xff]  ;;  %v977_v17 = vpack.c.bf16 %v92_v14, %v91_v12  ;;  %v93_v18 = vld [vmem:[#allocation5 + $0x1b0] sm:$0xff]  ;;  %v79_v22 = vld [vmem:[#allocation5 + $0x140] sm:$0xff] }
  0x36   :  { %933 = vmatpush3.bf16.msra.mxu0 %v932_v38  ;;  %v94_v19 = vld [vmem:[#allocation5 + $0x1b8] sm:$0xff]  ;;  %v95_v24 = vld [vmem:[#allocation5 + $0x1c0] sm:$0xff]  ;;  %v96_v25 = vld [vmem:[#allocation5 + $0x1c8] sm:$0xff] }
  0x37   :  { %915 = vmatpush3.bf16.msra.mxu1 %v914_v20  ;;  %934 = vmatprep.subr.bf16.mxu0 %v1112_v0  ;;  %v956_v20 = vpack.c.bf16 %v78_v16, %v77_v15  ;;  %v980_v21 = vpack.c.bf16 %v94_v19, %v93_v18  ;;  %v983_v27 = vpack.c.bf16 %v96_v25, %v95_v24  ;;  %v81_v28 = vld [vmem:[#allocation5 + $0x150] sm:$0xff]  ;;  %v98_v31 = vld [vmem:[#allocation5 + $0x1d8] sm:$0xff]  ;;  %v84_v42 = vld [vmem:[#allocation5 + $0x168] sm:$0xff] }
  0x38   :  { %916 = vmatprep.subr.bf16.mxu1 %v1112_v0  ;;  %v97_v30 = vld [vmem:[#allocation5 + $0x1d0] sm:$0xff]  ;;  %v99_v43 = vld [vmem:[#allocation5 + $0x1e0] sm:$0xff]  ;;  %v100_v45 = vld [vmem:[#allocation5 + $0x1e8] sm:$0xff] }
  0x39   :  { %v986_v33 = vpack.c.bf16 %v98_v31, %v97_v30  ;;  %v989_v46 = vpack.c.bf16 %v100_v45, %v99_v43  ;;  %v86_v48 = vld [vmem:[#allocation5 + $0x178] sm:$0xff]  ;;  %v101_v49 = vld [vmem:[#allocation5 + $0x1f0] sm:$0xff]  ;;  %v88_v54 = vld [vmem:[#allocation5 + $0x188] sm:$0xff] }
  0x3a   :  { %936 = vmatpush3.bf16.msra.mxu0 %v935_v41  ;;  %v83_v41 = vld [vmem:[#allocation5 + $0x160] sm:$0xff]  ;;  %v102_v51 = vld [vmem:[#allocation5 + $0x1f8] sm:$0xff]  ;;  %v104_v57 = vld [vmem:[#allocation5 + $0x208] sm:$0xff] }
  0x3b   :  { %918 = vmatpush3.bf16.msra.mxu1 %v917_v23  ;;  %937 = vmatprep.subr.bf16.mxu0 %v1112_v0  ;;  %v80_v23 = vld [vmem:[#allocation5 + $0x148] sm:$0xff]  ;;  %v992_v52 = vpack.c.bf16 %v102_v51, %v101_v49  ;;  %v103_v55 = vld [vmem:[#allocation5 + $0x200] sm:$0xff]  ;;  %v118_v34 = vld [vmem:[#allocation5 + $0x278] sm:$0xff] }
  0x3c   :  { %919 = vmatprep.subr.bf16.mxu1 %v1112_v0  ;;  %v107_v18 = vld [vmem:[#allocation5 + $0x220] sm:$0xff]  ;;  %v108_v19 = vld [vmem:[#allocation5 + $0x228] sm:$0xff]  ;;  %v122_v45 = vld [vmem:[#allocation5 + $0x298] sm:$0xff] }
  0x3d   :  { %v111_v24 = vld [vmem:[#allocation5 + $0x240] sm:$0xff]  ;;  %v112_v25 = vld [vmem:[#allocation5 + $0x248] sm:$0xff] }
  0x3e   :  { %939 = vmatpush3.bf16.msra.mxu0 %v938_v44  ;;  %v965_v44 = vpack.c.bf16 %v84_v42, %v83_v41  ;;  %v115_v30 = vld [vmem:[#allocation5 + $0x260] sm:$0xff]  ;;  %v116_v31 = vld [vmem:[#allocation5 + $0x268] sm:$0xff] }
  0x3f   :  { %921 = vmatpush3.bf16.msra.mxu1 %v920_v26  ;;  %940 = vmatprep.subr.bf16.mxu0 %v1112_v0  ;;  %v959_v26 = vpack.c.bf16 %v80_v23, %v79_v22  ;;  %v110_v22 = vld [vmem:[#allocation5 + $0x238] sm:$0xff]  ;;  %v119_v41 = vld [vmem:[#allocation5 + $0x280] sm:$0xff]  ;;  %v120_v42 = vld [vmem:[#allocation5 + $0x288] sm:$0xff] }
  0x40   :  { %922 = vmatprep.subr.bf16.mxu1 %v1112_v0  ;;  %v1019_v43 = vpack.c.bf16 %v120_v42, %v119_v41 }
  0x42   :  { %942 = vmatpush3.bf16.msra.mxu0 %v941_v47  ;;  %v85_v47 = vld [vmem:[#allocation5 + $0x170] sm:$0xff] }
  0x43   :  { %924 = vmatpush3.bf16.msra.mxu1 %v923_v29  ;;  %943 = vmatprep.subr.bf16.mxu0 %v1112_v0  ;;  %v82_v29 = vld [vmem:[#allocation5 + $0x158] sm:$0xff] }
  0x44   :  { %925 = vmatprep.subr.bf16.mxu1 %v1112_v0 }
  0x46   :  { %945 = vmatpush3.bf16.msra.mxu0 %v944_v50  ;;  %v968_v50 = vpack.c.bf16 %v86_v48, %v85_v47 }
  0x47   :  { %927 = vmatpush3.bf16.msra.mxu1 %v926_v32  ;;  %946 = vmatprep.subr.bf16.mxu0 %v1112_v0  ;;  %v962_v32 = vpack.c.bf16 %v82_v29, %v81_v28  ;;  %v114_v28 = vld [vmem:[#allocation5 + $0x258] sm:$0xff] }
  0x48   :  { %952 = vmatprep.subr.bf16.mxu1 %v1112_v0 }
  0x4a   :  { %948 = vmatpush3.bf16.msra.mxu0 %v947_v53  ;;  %v87_v53 = vld [vmem:[#allocation5 + $0x180] sm:$0xff] }
  0x4b   :  { %949 = vmatprep.subr.bf16.mxu0 %v1112_v0  ;;  %v971_v56 = vpack.c.bf16 %v88_v54, %v87_v53 }
  0x4e   :  { %951 = vmatpush3.bf16.msra.mxu0 %v950_v3 }
  0x4f   :  { %976 = vmatprep.subr.bf16.mxu0 %v1112_v0 }
 0x104   :  { %v198_v59 = vpop.f32.mrb[0].mxu0 }
 0x105   :  { %v199_v60 = vadd.f32 %v198_v59, %v127_v58  ;;  %v722_v61 = vpop.f32.mrb[1].mxu0  ;;  %v89_v58 = vld [vmem:[#allocation5 + $0x190] sm:$0xff]  ;;  %v90_v59 = vld [vmem:[#allocation5 + $0x198] sm:$0xff] }
 0x106   :  { %v105_v61 = vld [vmem:[#allocation5 + $0x210] sm:$0xff]  ;;  %v974_v63 = vpack.c.bf16 %v90_v59, %v89_v58 }
 0x107   :  { %v202_v62 = vmax.f32 %v199_v60, 0.0  ;;  %v995_v60 = vpack.c.bf16 %v104_v57, %v103_v55 }
 0x109   :  { %756 = vmatmul.mubr.f32.vlgmr.msra.gmra.mrb[0].mxu1 %v202_v62  ;;  %v106_v62 = vld [vmem:[#allocation5 + $0x218] sm:$0xff] }
 0x10a   :  { %825 = vmatprep.mubr.msk.f32.mxu1 %vm1113_vm0, %v1114_v1  ;;  %954 = vmatpush3.bf16.msra.mxu1 %v953_v13  ;;  %v998_v2 = vpack.c.bf16 %v106_v62, %v105_v61 }
 0x10b   :  { %955 = vmatprep.subr.bf16.mxu1 %v1112_v0 }
 0x10e   :  { %957 = vmatpush3.bf16.msra.mxu1 %v956_v20  ;;  %v109_v20 = vld [vmem:[#allocation5 + $0x230] sm:$0xff] }
 0x10f   :  { %958 = vmatprep.subr.bf16.mxu1 %v1112_v0  ;;  %v1004_v23 = vpack.c.bf16 %v110_v22, %v109_v20 }
 0x112   :  { %960 = vmatpush3.bf16.msra.mxu1 %v959_v26  ;;  %v1007_v26 = vpack.c.bf16 %v112_v25, %v111_v24 }
 0x113   :  { %961 = vmatprep.subr.bf16.mxu1 %v1112_v0 }
 0x116   :  { %963 = vmatpush3.bf16.msra.mxu1 %v962_v32  ;;  %v1013_v32 = vpack.c.bf16 %v116_v31, %v115_v30 }
 0x117   :  { %964 = vmatprep.subr.bf16.mxu1 %v1112_v0 }
 0x11a   :  { %966 = vmatpush3.bf16.msra.mxu1 %v965_v44  ;;  %v121_v44 = vld [vmem:[#allocation5 + $0x290] sm:$0xff] }
 0x11b   :  { %967 = vmatprep.subr.bf16.mxu1 %v1112_v0 }
 0x11e   :  { %969 = vmatpush3.bf16.msra.mxu1 %v968_v50 }
 0x11f   :  { %970 = vmatprep.subr.bf16.mxu1 %v1112_v0 }
 0x122   :  { %972 = vmatpush3.bf16.msra.mxu1 %v971_v56 }
 0x123   :  { %973 = vmatprep.subr.bf16.mxu1 %v1112_v0 }
 0x126   :  { %975 = vmatpush3.bf16.msra.mxu1 %v974_v63 }
 0x127   :  { %1000 = vmatprep.subr.bf16.mxu1 %v1112_v0 }
 0x1dc   :  { %v273_v6 = vpop.f32.mrb[0].mxu1 }
 0x1dd   :  { %v274_v7 = vadd.f32 %v273_v6, %v206_v5  ;;  %v757_v8 = vpop.f32.mrb[1].mxu1 }
 0x1df   :  { %v277_v9 = vmax.f32 %v274_v7, 0.0 }
 0x1e1   :  { %791 = vmatmul.mubr.f32.vlgmr.msra.gmra.mrb[2].mxu0 %v277_v9 }
 0x1e2   :  { %860 = vmatprep.mubr.msk.f32.mxu0 %vm1113_vm0, %v1114_v1  ;;  %978 = vmatpush3.bf16.msra.mxu0 %v977_v17 }
 0x1e3   :  { %979 = vmatprep.subr.bf16.mxu0 %v1112_v0 }
 0x1e6   :  { %981 = vmatpush3.bf16.msra.mxu0 %v980_v21  ;;  %v1001_v21 = vpack.c.bf16 %v108_v19, %v107_v18 }
 0x1e7   :  { %982 = vmatprep.subr.bf16.mxu0 %v1112_v0 }
 0x1ea   :  { %984 = vmatpush3.bf16.msra.mxu0 %v983_v27  ;;  %v113_v27 = vld [vmem:[#allocation5 + $0x250] sm:$0xff] }
 0x1eb   :  { %985 = vmatprep.subr.bf16.mxu0 %v1112_v0  ;;  %v1010_v29 = vpack.c.bf16 %v114_v28, %v113_v27 }
 0x1ee   :  { %987 = vmatpush3.bf16.msra.mxu0 %v986_v33  ;;  %v117_v33 = vld [vmem:[#allocation5 + $0x270] sm:$0xff] }
 0x1ef   :  { %988 = vmatprep.subr.bf16.mxu0 %v1112_v0 }
 0x1f2   :  { %990 = vmatpush3.bf16.msra.mxu0 %v989_v46  ;;  %v1022_v46 = vpack.c.bf16 %v122_v45, %v121_v44 }
 0x1f3   :  { %991 = vmatprep.subr.bf16.mxu0 %v1112_v0 }
 0x1f6   :  { %993 = vmatpush3.bf16.msra.mxu0 %v992_v52 }
 0x1f7   :  { %994 = vmatprep.subr.bf16.mxu0 %v1112_v0 }
 0x1fa   :  { %996 = vmatpush3.bf16.msra.mxu0 %v995_v60 }
 0x1fb   :  { %997 = vmatprep.subr.bf16.mxu0 %v1112_v0 }
 0x1fe   :  { %999 = vmatpush3.bf16.msra.mxu0 %v998_v2 }
 0x2b4   :  { %v348_v37 = vpop.f32.mrb[2].mxu0 }
 0x2b5   :  { %v349_v38 = vadd.f32 %v348_v37, %v281_v36  ;;  %v792_v39 = vpop.f32.mrb[3].mxu0  ;;  %v1016_v36 = vpack.c.bf16 %v118_v34, %v117_v33 }
 0x2b7   :  { %v355_v40 = vsel %vm354_vm2, %v349_v38, -inf }
 0x2b8   :  { %356 = vmax.xlane.f32.xlu0 %v355_v40 }
 0x345   :  { %v357_v3 = vpop.xlane.xlu0 %356 }
 0x346   :  { %v358_v4 = vsub.f32 %v355_v40, %v357_v3 }
 0x348   :  { %v359_v5 = vmul.f32 1.442695, %v358_v4 }
 0x34a   :  { %1032 = vpow2.f32 %v359_v5 }
 0x354   :  { %v1224_v6 = vpop.eup %1032 }
 0x355   :  { %826 = vmatmul.mubr.f32.vlgmr.msra.gmra.mrb[2].mxu1 %v1224_v6  ;;  %861 = vmatmul.mubr.f32.vlgmr.msra.gmra.mrb[4].mxu0 %v1224_v6 }
 0x356   :  { %895 = vmatprep.mubr.msk.f32.mxu1 %vm1113_vm0, %v1114_v1  ;;  %1002 = vmatpush3.bf16.msra.mxu1 %v1001_v21 }
 0x357   :  { %1003 = vmatprep.subr.bf16.mxu1 %v1112_v0 }
 0x35a   :  { %1005 = vmatpush3.bf16.msra.mxu1 %v1004_v23 }
 0x35b   :  { %1006 = vmatprep.subr.bf16.mxu1 %v1112_v0 }
 0x35e   :  { %1008 = vmatpush3.bf16.msra.mxu1 %v1007_v26 }
 0x35f   :  { %1009 = vmatprep.subr.bf16.mxu1 %v1112_v0 }
 0x362   :  { %1011 = vmatpush3.bf16.msra.mxu1 %v1010_v29 }
 0x363   :  { %1012 = vmatprep.subr.bf16.mxu1 %v1112_v0 }
 0x366   :  { %1014 = vmatpush3.bf16.msra.mxu1 %v1013_v32 }
 0x367   :  { %1015 = vmatprep.subr.bf16.mxu1 %v1112_v0 }
 0x36a   :  { %1017 = vmatpush3.bf16.msra.mxu1 %v1016_v36 }
 0x36b   :  { %1018 = vmatprep.subr.bf16.mxu1 %v1112_v0 }
 0x36e   :  { %1020 = vmatpush3.bf16.msra.mxu1 %v1019_v43 }
 0x36f   :  { %1021 = vmatprep.subr.bf16.mxu1 %v1112_v0 }
 0x372   :  { %1023 = vmatpush3.bf16.msra.mxu1 %v1022_v46 }
 0x428   :  { %v427_v7 = vpop.f32.mrb[2].mxu1  ;;  %v500_v8 = vpop.f32.mrb[4].mxu0 }
 0x429   :  { %v431_v9 = vsel %vm354_vm2, %v427_v7, 1.0  ;;  %v827_v10 = vpop.f32.mrb[3].mxu1  ;;  %v862_v11 = vpop.f32.mrb[5].mxu0 }
 0x42a   :  { %1034 = vrcp.f32 %v431_v9 }
 0x434   :  { %v1035_v12 = vpop.eup %1034 }
 0x435   :  { %v504_v13 = vmul.f32 %v1035_v12, %v500_v8  ;;  %v433_v53 = vmul.f32 %v1035_v12, %v1224_v6 }
 0x437   :  { %v505_v14 = vsel %vm354_vm2, %v504_v13, -inf }
 0x438   :  { %506 = vmax.xlane.f32.xlu0 %v505_v14 }
 0x4c5   :  { %v507_v15 = vpop.xlane.xlu0 %506 }
 0x4c6   :  { %vm508_vm3 = vcmp.eq.f32.partialorder %v504_v13, %v507_v15 }
 0x4c7   :  { %vm509_vm4 = vmand %vm508_vm3, %vm354_vm2 }
 0x4c8   :  { %v510_v1 = vsel %vm509_vm4, %v1211_v35, 128 }
 0x4c9   :  { %v512_v16 = vshra.s32 %v510_v1, 16  ;;  %v511_v37 = vand.u32 65535, %v510_v1 }
 0x4cb   :  { %v514_v17 = vcvt.s32.f32 %v512_v16  ;;  %v513_v39 = vcvt.s32.f32 %v511_v37 }
 0x4cd   :  { %515 = vmin.xlane.f32.xlu1 %v514_v17 }
 0x55a   :  { %v516_v38 = vpop.xlane.xlu1 %515 }
 0x55b   :  { %vm517_vm5 = vcmp.eq.f32.partialorder %v514_v17, %v516_v38  ;;  %v522_v47 = vcvt.f32.s32 %v516_v38 }
 0x55c   :  { %v518_v40 = vsel %vm517_vm5, %v513_v39, inf }
 0x55d   :  { %519 = vmin.xlane.f32.xlu1 %v518_v40  ;;  %v523_v49 = vshll.u32 %v522_v47, 16 }
 0x5ea   :  { %v520_v48 = vpop.xlane.xlu1 %519 }
 0x5eb   :  { %v521_v50 = vcvt.f32.s32 %v520_v48 }
 0x5ed   :  { %v524_v51 = vadd.s32 %v523_v49, %v521_v50 }
 0x5ef   :  { %v526_v52 = vadd.s32 16, %v524_v51  ;;  %vm525_vm6 = vcmp.ge.s32.totalorder %v1211_v35, %v524_v51  ;;  %v601_v0 = vcvt.s32.f32 %v524_v51 }
 0x5f1   :  { %vm527_vm7 = vcmp.lt.s32.totalorder %v1211_v35, %v526_v52 }
 0x5f2   :  { %vm528_vm8 = vmand %vm525_vm6, %vm527_vm7 }
 0x5f3   :  { %896 = vmatmul.mubr.msk.f32.vlgmr.msra.gmra.mrb[4].mxu1 %vm528_vm8, %v433_v53 }
 0x6c6   :  { %v596_v54 = vpop.f32.mrb[4].mxu1 }
 0x6c7   :  { %v602_v55 = vsel %vm600_vm9, %v601_v0, %v596_v54  ;;  %v897_v56 = vpop.f32.mrb[5].mxu1 }
 0x6c8   :  { %603 = vst [vmem:[#allocation7] sm:$0xff] %v602_v55 }
 0x6c9   :  { %1091 = shalt.err (!%p1088_p6)
}
 0x6ca   :  { %s1092_s10 = scalar_lea.hbm %s1262_s2, 128 }
 0x6cb   :  { %p1093_p7 = scmp.ne.s32.totalorder %s1262_s2, %s1092_s10  ;;  %p1096_p8 = scmp.lt.u32.totalorder %s1092_s10, %s1262_s2 }
 0x6cd   :  { %p1098_p9 = pnand %p1096_p8, %p1093_p7 }
 0x6cf   :  { %1101 = shalt.err (!%p1098_p9)
}
 0x6d0   :  { %613 = dma.vmem_to_hbm [thread:$0]  %s611_s6, 128, %s1262_s2, [#allocation4]  }
 0x6d1   :  { %1106 = dma.done.wait [#allocation4], 128  }
 0x6d2   :  { %1107 = vsyncadd [#allocation4], 4294967168 }
 0x6d3   :  { %617 = vsyncpa [#allocation3], 1 }
 0x6d4   :  { %618 = vsyncpa [#allocation6], 1 }
 0x6d5   :  { %619 = vsyncpa [#allocation4], 1 }

</bundles_post_ra>
